<compile_context>
chip_gen: v7x
topology: tpu7x:2x2x1
jax: 0.10.0
libtpu: 0.0.40
codegen_flags: <defaults>
</compile_context>

<pallas_src>
import numpy as np
import jax
import jax.numpy as jnp
from jax import lax
from jax.experimental import pallas as pl
from jax.experimental.pallas import tpu as pltpu

# ---------------- configuration (small synthetic shapes) --------------------
B, C, H, W = 2, 4, 16, 16     # input image  NCHW
CD = 8                        # det conv out channels
KH = KW = 3                   # det conv kernel (3x3, "same" padding)
VOCAB = 40                    # rec vocab size
D_REC = C * H                 # rec per-column feature dim
HW = H * W

assert (W & (W - 1)) == 0, "W must be a power of two (lane index bit tricks)"
_LOG2_W = W.bit_length() - 1


# ---------------- fused det + rec kernel (one image per grid step) ----------
def _ocr_kernel(xflat_ref, xcol_ref, wdet_ref, bdet_ref, wrec_ref, brec_ref,
                prob_ref, ids_ref):
    # ------------- det: in-kernel im2col via lane rolls + 9 bf16 matmuls ----
    # xflat_ref: (1, C, H*W) f32   wdet_ref: (9, CD, C) bf16   bdet_ref: (CD, 1)
    x = xflat_ref[0]                                         # (C, HW) f32
    lane = lax.broadcasted_iota(jnp.int32, (1, HW), 1)
    wpos = jnp.bitwise_and(lane, W - 1)                      # w = i % W
    hpos = jnp.right_shift(lane, _LOG2_W)                    # h = i // W

    acc = jnp.zeros((CD, HW), jnp.float32)
    for t in range(KH * KW):                                 # static unroll, 9 taps
        oy = t // KW - 1
        ox = t % KW - 1
        s = oy * W + ox                                      # flat shift of this tap
        if s == 0:
            xs = x
        else:
            xs = pltpu.roll(x, shift=(-s) % HW, axis=1)      # xs[:, i] = x[:, i + s]
        if not (oy == 0 and ox == 0):                        # "same"-padding boundary
            valid = ((wpos + ox >= 0) & (wpos + ox < W) &
                     (hpos + oy >= 0) & (hpos + oy < H))
            xs = jnp.where(valid, xs, 0.0)
        acc += jnp.dot(wdet_ref[t], xs.astype(jnp.bfloat16),
                       preferred_element_type=jnp.float32)   # (CD, HW) f32 accum
    prob = jax.nn.sigmoid(acc + bdet_ref[...])               # (CD, HW) f32
    prob_ref[0] = prob.astype(prob_ref.dtype)                # lane-dense (256) store

    # ------------- rec: column features -> vocab logits -> argmax ids -------
    # xcol_ref: (1, C*H, W) bf16   wrec_ref: (VOCAB, C*H) bf16   brec_ref: (VOCAB, 1)
    logits = jnp.dot(wrec_ref[...], xcol_ref[0],
                     preferred_element_type=jnp.float32) + brec_ref[...]   # (V, W)
    maxv = jnp.max(logits, axis=0, keepdims=True)            # (1, W)
    vio = lax.broadcasted_iota(jnp.int32, logits.shape, 0).astype(jnp.float32)
    ids = jnp.min(jnp.where(logits >= maxv, vio, jnp.float32(VOCAB)),
                  axis=0, keepdims=True)                     # first-max == argmax
    ids_ref[0] = ids.astype(jnp.int32)                       # (1, W) int token ids


# ---------------- OCRInfer.forward equivalent --------------------------------
@jax.jit
def ocr_infer(img, w_det, b_det, w_rec, b_rec):
    Bn, Cn, Hn, Wn = img.shape
    HWn = Hn * Wn

    # layout glue: free reshapes + tiny one-time weight repacks (NO im2col in HBM)
    x_flat = img.reshape(Bn, Cn, HWn)                               # f32 det view
    x_col = img.astype(jnp.bfloat16).reshape(Bn, Cn * Hn, Wn)       # bf16 rec view
    wdet_k = jnp.transpose(w_det, (2, 3, 0, 1)).reshape(KH * KW, CD, Cn)
    wdet_k = wdet_k.astype(jnp.bfloat16)                            # (9, CD, C)
    bdet_k = b_det.reshape(CD, 1).astype(jnp.float32)
    wrec_k = w_rec.astype(jnp.bfloat16)                             # (VOCAB, C*H)
    brec_k = b_rec.reshape(VOCAB, 1).astype(jnp.float32)

    prob, ids3 = pl.pallas_call(
        _ocr_kernel,
        grid=(Bn,),
        in_specs=[
            pl.BlockSpec((1, Cn, HWn), lambda b: (b, 0, 0)),
            pl.BlockSpec((1, Cn * Hn, Wn), lambda b: (b, 0, 0)),
            pl.BlockSpec((KH * KW, CD, Cn), lambda b: (0, 0, 0)),
            pl.BlockSpec((CD, 1), lambda b: (0, 0)),
            pl.BlockSpec((VOCAB, Cn * Hn), lambda b: (0, 0)),
            pl.BlockSpec((VOCAB, 1), lambda b: (0, 0)),
        ],
        out_specs=(
            pl.BlockSpec((1, CD, HWn), lambda b: (b, 0, 0)),
            pl.BlockSpec((1, 1, Wn), lambda b: (b, 0, 0)),
        ),
        out_shape=(
            jax.ShapeDtypeStruct((Bn, CD, HWn), jnp.float32),   # prob map (lane-dense)
            jax.ShapeDtypeStruct((Bn, 1, Wn), jnp.int32),       # rec token ids
        ),
        compiler_params=pltpu.CompilerParams(
            dimension_semantics=("parallel",)),                 # 2 TCs on v7x
    )(x_flat, x_col, wdet_k, bdet_k, wrec_k, brec_k)

    debug_img = prob.reshape(Bn, CD, Hn, Wn)     # free reshape, already NCHW order
    score_list = jnp.mean(prob, axis=(1, 2))     # tiny reduce over the 16 KB prob map
    texts = ids3.reshape(Bn, Wn)
    # TODO(synk): box extraction / perspective crop of detected text regions has
    # no clean Pallas equivalent (data-dependent geometry); rec runs on the full
    # image columns.
    return texts, score_list, debug_img


if __name__ == "__main__":
    key = jax.random.PRNGKey(0)
    k_img, k_wd, k_bd, k_wr, k_br = jax.random.split(key, 5)

    img = jax.random.normal(k_img, (B, C, H, W), dtype=jnp.float32)

    # deterministic synthetic parameters (PyTorch-style layouts)
    w_det = jax.random.normal(k_wd, (CD, C, KH, KW), dtype=jnp.float32) * 0.1
    b_det = jax.random.normal(k_bd, (CD,), dtype=jnp.float32) * 0.01
    w_rec = jax.random.normal(k_wr, (VOCAB, D_REC), dtype=jnp.float32) * 0.1
    b_rec = jax.random.normal(k_br, (VOCAB,), dtype=jnp.float32) * 0.01

    texts, score_list, debug_img = ocr_infer(img, w_det, b_det, w_rec, b_rec)
    jax.block_until_ready((texts, score_list, debug_img))

    assert texts.shape == (B, W) and texts.dtype == jnp.int32
    assert score_list.shape == (B,)
    assert debug_img.shape == (B, CD, H, W)

    # ---- pure-JAX reference (same bf16-rounded matmul inputs, f32 accum) ----
    img_r = img.astype(jnp.bfloat16).astype(jnp.float32)
    wdet_r = w_det.astype(jnp.bfloat16).astype(jnp.float32)
    ref_prob = jax.nn.sigmoid(
        lax.conv(img_r, wdet_r, (1, 1), "SAME") + b_det.reshape(1, CD, 1, 1))
    ref_score = jnp.mean(ref_prob, axis=(1, 2, 3))
    wrec_r = w_rec.astype(jnp.bfloat16).astype(jnp.float32)
    feats_r = img_r.transpose(0, 3, 1, 2).reshape(B, W, D_REC)
    ref_logits = jnp.einsum("bwk,vk->bwv", feats_r, wrec_r) + b_rec
    ref_texts = jnp.argmax(ref_logits, axis=-1)

    np.testing.assert_allclose(np.asarray(debug_img), np.asarray(ref_prob),
                               rtol=2e-3, atol=2e-3)
    np.testing.assert_allclose(np.asarray(score_list), np.asarray(ref_score),
                               rtol=2e-3, atol=2e-3)
    assert np.array_equal(np.asarray(texts), np.asarray(ref_texts))

    print("KERNEL_OK")
</pallas_src>

<mosaic_0001>
module attributes {stable_mosaic.version = 11 : i64} {
  func.func @_ocr_kernel(%arg0: i32, %arg1: memref<1x4x256xf32, #tpu.memory_space<vmem>>, %arg2: memref<1x64x16xbf16, #tpu.memory_space<vmem>>, %arg3: memref<9x8x4xbf16, #tpu.memory_space<vmem>>, %arg4: memref<8x1xf32, #tpu.memory_space<vmem>>, %arg5: memref<40x64xbf16, #tpu.memory_space<vmem>>, %arg6: memref<40x1xf32, #tpu.memory_space<vmem>>, %arg7: memref<1x8x256xf32, #tpu.memory_space<vmem>>, %arg8: memref<1x1x16xi32, #tpu.memory_space<vmem>>) attributes {dimension_semantics = [#tpu.dimension_semantics<parallel>], iteration_bounds = array<i64: 2>, scalar_prefetch = 0 : i64, scratch_operands = 0 : i64, tpu.core_type = #tpu.core_type<tc>, window_params = [{transform_indices = @transform_0, window_bounds = array<i64: 1, 4, 256>}, {transform_indices = @transform_1, window_bounds = array<i64: 1, 64, 16>}, {pipeline_mode = #tpu.pipeline_mode<synchronous>, transform_indices = @transform_2, window_bounds = array<i64: 9, 8, 4>}, {pipeline_mode = #tpu.pipeline_mode<synchronous>, transform_indices = @transform_3, window_bounds = array<i64: 8, 1>}, {pipeline_mode = #tpu.pipeline_mode<synchronous>, transform_indices = @transform_4, window_bounds = array<i64: 40, 64>}, {pipeline_mode = #tpu.pipeline_mode<synchronous>, transform_indices = @transform_5, window_bounds = array<i64: 40, 1>}, {transform_indices = @transform_6, window_bounds = array<i64: 1, 8, 256>}, {transform_indices = @transform_7, window_bounds = array<i64: 1, 1, 16>}]} {
    %c0 = arith.constant 0 : index
    %c0_0 = arith.constant 0 : index
    %c0_1 = arith.constant 0 : index
    %0 = vector.load %arg1[%c0, %c0_0, %c0_1] : memref<1x4x256xf32, #tpu.memory_space<vmem>>, vector<1x4x256xf32>
    %1 = vector.shape_cast %0 : vector<1x4x256xf32> to vector<4x256xf32>
    %2 = tpu.iota {dimensions = array<i32: 1>} : vector<1x256xi32>
    %c15_i32 = arith.constant 15 : i32
    %3 = vector.broadcast %c15_i32 : i32 to vector<1x256xi32>
    %4 = arith.andi %2, %3 : vector<1x256xi32>
    %c4_i32 = arith.constant 4 : i32
    %5 = vector.broadcast %c4_i32 : i32 to vector<1x256xi32>
    %6 = arith.shrsi %2, %5 : vector<1x256xi32>
    %cst = arith.constant 0.000000e+00 : f32
    %7 = vector.broadcast %cst : f32 to vector<8x256xf32>
    %c17_i32 = arith.constant 17 : i32
    %8 = tpu.dynamic_rotate %1 by %c17_i32 dim 1 : vector<4x256xf32>, i32 -> vector<4x256xf32>
    %c-1_i32 = arith.constant -1 : i32
    %9 = vector.broadcast %c-1_i32 : i32 to vector<1x256xi32>
    %10 = arith.addi %4, %9 : vector<1x256xi32>
    %c0_i32 = arith.constant 0 : i32
    %11 = vector.broadcast %c0_i32 : i32 to vector<1x256xi32>
    %12 = arith.cmpi sge, %10, %11 : vector<1x256xi32>
    %c-1_i32_2 = arith.constant -1 : i32
    %13 = vector.broadcast %c-1_i32_2 : i32 to vector<1x256xi32>
    %14 = arith.addi %4, %13 : vector<1x256xi32>
    %c16_i32 = arith.constant 16 : i32
    %15 = vector.broadcast %c16_i32 : i32 to vector<1x256xi32>
    %16 = arith.cmpi slt, %14, %15 : vector<1x256xi32>
    %17 = arith.andi %12, %16 : vector<1x256xi1>
    %c-1_i32_3 = arith.constant -1 : i32
    %18 = vector.broadcast %c-1_i32_3 : i32 to vector<1x256xi32>
    %19 = arith.addi %6, %18 : vector<1x256xi32>
    %c0_i32_4 = arith.constant 0 : i32
    %20 = vector.broadcast %c0_i32_4 : i32 to vector<1x256xi32>
    %21 = arith.cmpi sge, %19, %20 : vector<1x256xi32>
    %22 = arith.andi %17, %21 : vector<1x256xi1>
    %c-1_i32_5 = arith.constant -1 : i32
    %23 = vector.broadcast %c-1_i32_5 : i32 to vector<1x256xi32>
    %24 = arith.addi %6, %23 : vector<1x256xi32>
    %c16_i32_6 = arith.constant 16 : i32
    %25 = vector.broadcast %c16_i32_6 : i32 to vector<1x256xi32>
    %26 = arith.cmpi slt, %24, %25 : vector<1x256xi32>
    %27 = arith.andi %22, %26 : vector<1x256xi1>
    %cst_7 = arith.constant 0.000000e+00 : f32
    %28 = vector.shape_cast %27 : vector<1x256xi1> to vector<1x256xi1>
    %29 = vector.broadcast %28 : vector<1x256xi1> to vector<4x256xi1>
    %30 = vector.broadcast %cst_7 : f32 to vector<4x256xf32>
    %31 = arith.select %29, %8, %30 : vector<4x256xi1>, vector<4x256xf32>
    %c0_8 = arith.constant 0 : index
    %c0_9 = arith.constant 0 : index
    %c0_10 = arith.constant 0 : index
    %32 = vector.load %arg3[%c0_8, %c0_9, %c0_10] : memref<9x8x4xbf16, #tpu.memory_space<vmem>>, vector<1x8x4xbf16>
    %33 = vector.shape_cast %32 : vector<1x8x4xbf16> to vector<8x4xbf16>
    %34 = arith.truncf %31 : vector<4x256xf32> to vector<4x256xbf16>
    %cst_11 = arith.constant dense<0.000000e+00> : vector<8x256xf32>
    %35 = tpu.matmul %33, %34, %cst_11 {dimension_numbers = #tpu.dot_dimension_numbers<[1], [0], [0], [1], [0, 0, 1, 1], [], []>} : vector<8x4xbf16>, vector<4x256xbf16>, vector<8x256xf32> -> vector<8x256xf32>
    %36 = arith.addf %7, %35 : vector<8x256xf32>
    %c16_i32_12 = arith.constant 16 : i32
    %37 = tpu.dynamic_rotate %1 by %c16_i32_12 dim 1 : vector<4x256xf32>, i32 -> vector<4x256xf32>
    %c0_i32_13 = arith.constant 0 : i32
    %38 = vector.broadcast %c0_i32_13 : i32 to vector<1x256xi32>
    %39 = arith.addi %4, %38 : vector<1x256xi32>
    %c0_i32_14 = arith.constant 0 : i32
    %40 = vector.broadcast %c0_i32_14 : i32 to vector<1x256xi32>
    %41 = arith.cmpi sge, %39, %40 : vector<1x256xi32>
    %c0_i32_15 = arith.constant 0 : i32
    %42 = vector.broadcast %c0_i32_15 : i32 to vector<1x256xi32>
    %43 = arith.addi %4, %42 : vector<1x256xi32>
    %c16_i32_16 = arith.constant 16 : i32
    %44 = vector.broadcast %c16_i32_16 : i32 to vector<1x256xi32>
    %45 = arith.cmpi slt, %43, %44 : vector<1x256xi32>
    %46 = arith.andi %41, %45 : vector<1x256xi1>
    %c-1_i32_17 = arith.constant -1 : i32
    %47 = vector.broadcast %c-1_i32_17 : i32 to vector<1x256xi32>
    %48 = arith.addi %6, %47 : vector<1x256xi32>
    %c0_i32_18 = arith.constant 0 : i32
    %49 = vector.broadcast %c0_i32_18 : i32 to vector<1x256xi32>
    %50 = arith.cmpi sge, %48, %49 : vector<1x256xi32>
    %51 = arith.andi %46, %50 : vector<1x256xi1>
    %c-1_i32_19 = arith.constant -1 : i32
    %52 = vector.broadcast %c-1_i32_19 : i32 to vector<1x256xi32>
    %53 = arith.addi %6, %52 : vector<1x256xi32>
    %c16_i32_20 = arith.constant 16 : i32
    %54 = vector.broadcast %c16_i32_20 : i32 to vector<1x256xi32>
    %55 = arith.cmpi slt, %53, %54 : vector<1x256xi32>
    %56 = arith.andi %51, %55 : vector<1x256xi1>
    %cst_21 = arith.constant 0.000000e+00 : f32
    %57 = vector.shape_cast %56 : vector<1x256xi1> to vector<1x256xi1>
    %58 = vector.broadcast %57 : vector<1x256xi1> to vector<4x256xi1>
    %59 = vector.broadcast %cst_21 : f32 to vector<4x256xf32>
    %60 = arith.select %58, %37, %59 : vector<4x256xi1>, vector<4x256xf32>
    %c1 = arith.constant 1 : index
    %c0_22 = arith.constant 0 : index
    %c0_23 = arith.constant 0 : index
    %61 = vector.load %arg3[%c1, %c0_22, %c0_23] : memref<9x8x4xbf16, #tpu.memory_space<vmem>>, vector<1x8x4xbf16>
    %62 = vector.shape_cast %61 : vector<1x8x4xbf16> to vector<8x4xbf16>
    %63 = arith.truncf %60 : vector<4x256xf32> to vector<4x256xbf16>
    %cst_24 = arith.constant dense<0.000000e+00> : vector<8x256xf32>
    %64 = tpu.matmul %62, %63, %cst_24 {dimension_numbers = #tpu.dot_dimension_numbers<[1], [0], [0], [1], [0, 0, 1, 1], [], []>} : vector<8x4xbf16>, vector<4x256xbf16>, vector<8x256xf32> -> vector<8x256xf32>
    %65 = arith.addf %36, %64 : vector<8x256xf32>
    %c15_i32_25 = arith.constant 15 : i32
    %66 = tpu.dynamic_rotate %1 by %c15_i32_25 dim 1 : vector<4x256xf32>, i32 -> vector<4x256xf32>
    %c1_i32 = arith.constant 1 : i32
    %67 = vector.broadcast %c1_i32 : i32 to vector<1x256xi32>
    %68 = arith.addi %4, %67 : vector<1x256xi32>
    %c0_i32_26 = arith.constant 0 : i32
    %69 = vector.broadcast %c0_i32_26 : i32 to vector<1x256xi32>
    %70 = arith.cmpi sge, %68, %69 : vector<1x256xi32>
    %c1_i32_27 = arith.constant 1 : i32
    %71 = vector.broadcast %c1_i32_27 : i32 to vector<1x256xi32>
    %72 = arith.addi %4, %71 : vector<1x256xi32>
    %c16_i32_28 = arith.constant 16 : i32
    %73 = vector.broadcast %c16_i32_28 : i32 to vector<1x256xi32>
    %74 = arith.cmpi slt, %72, %73 : vector<1x256xi32>
    %75 = arith.andi %70, %74 : vector<1x256xi1>
    %c-1_i32_29 = arith.constant -1 : i32
    %76 = vector.broadcast %c-1_i32_29 : i32 to vector<1x256xi32>
    %77 = arith.addi %6, %76 : vector<1x256xi32>
    %c0_i32_30 = arith.constant 0 : i32
    %78 = vector.broadcast %c0_i32_30 : i32 to vector<1x256xi32>
    %79 = arith.cmpi sge, %77, %78 : vector<1x256xi32>
    %80 = arith.andi %75, %79 : vector<1x256xi1>
    %c-1_i32_31 = arith.constant -1 : i32
    %81 = vector.broadcast %c-1_i32_31 : i32 to vector<1x256xi32>
    %82 = arith.addi %6, %81 : vector<1x256xi32>
    %c16_i32_32 = arith.constant 16 : i32
    %83 = vector.broadcast %c16_i32_32 : i32 to vector<1x256xi32>
    %84 = arith.cmpi slt, %82, %83 : vector<1x256xi32>
    %85 = arith.andi %80, %84 : vector<1x256xi1>
    %cst_33 = arith.constant 0.000000e+00 : f32
    %86 = vector.shape_cast %85 : vector<1x256xi1> to vector<1x256xi1>
    %87 = vector.broadcast %86 : vector<1x256xi1> to vector<4x256xi1>
    %88 = vector.broadcast %cst_33 : f32 to vector<4x256xf32>
    %89 = arith.select %87, %66, %88 : vector<4x256xi1>, vector<4x256xf32>
    %c2 = arith.constant 2 : index
    %c0_34 = arith.constant 0 : index
    %c0_35 = arith.constant 0 : index
    %90 = vector.load %arg3[%c2, %c0_34, %c0_35] : memref<9x8x4xbf16, #tpu.memory_space<vmem>>, vector<1x8x4xbf16>
    %91 = vector.shape_cast %90 : vector<1x8x4xbf16> to vector<8x4xbf16>
    %92 = arith.truncf %89 : vector<4x256xf32> to vector<4x256xbf16>
    %cst_36 = arith.constant dense<0.000000e+00> : vector<8x256xf32>
    %93 = tpu.matmul %91, %92, %cst_36 {dimension_numbers = #tpu.dot_dimension_numbers<[1], [0], [0], [1], [0, 0, 1, 1], [], []>} : vector<8x4xbf16>, vector<4x256xbf16>, vector<8x256xf32> -> vector<8x256xf32>
    %94 = arith.addf %65, %93 : vector<8x256xf32>
    %c1_i32_37 = arith.constant 1 : i32
    %95 = tpu.dynamic_rotate %1 by %c1_i32_37 dim 1 : vector<4x256xf32>, i32 -> vector<4x256xf32>
    %c-1_i32_38 = arith.constant -1 : i32
    %96 = vector.broadcast %c-1_i32_38 : i32 to vector<1x256xi32>
    %97 = arith.addi %4, %96 : vector<1x256xi32>
    %c0_i32_39 = arith.constant 0 : i32
    %98 = vector.broadcast %c0_i32_39 : i32 to vector<1x256xi32>
    %99 = arith.cmpi sge, %97, %98 : vector<1x256xi32>
    %c-1_i32_40 = arith.constant -1 : i32
    %100 = vector.broadcast %c-1_i32_40 : i32 to vector<1x256xi32>
    %101 = arith.addi %4, %100 : vector<1x256xi32>
    %c16_i32_41 = arith.constant 16 : i32
    %102 = vector.broadcast %c16_i32_41 : i32 to vector<1x256xi32>
    %103 = arith.cmpi slt, %101, %102 : vector<1x256xi32>
    %104 = arith.andi %99, %103 : vector<1x256xi1>
    %c0_i32_42 = arith.constant 0 : i32
    %105 = vector.broadcast %c0_i32_42 : i32 to vector<1x256xi32>
    %106 = arith.addi %6, %105 : vector<1x256xi32>
    %c0_i32_43 = arith.constant 0 : i32
    %107 = vector.broadcast %c0_i32_43 : i32 to vector<1x256xi32>
    %108 = arith.cmpi sge, %106, %107 : vector<1x256xi32>
    %109 = arith.andi %104, %108 : vector<1x256xi1>
    %c0_i32_44 = arith.constant 0 : i32
    %110 = vector.broadcast %c0_i32_44 : i32 to vector<1x256xi32>
    %111 = arith.addi %6, %110 : vector<1x256xi32>
    %c16_i32_45 = arith.constant 16 : i32
    %112 = vector.broadcast %c16_i32_45 : i32 to vector<1x256xi32>
    %113 = arith.cmpi slt, %111, %112 : vector<1x256xi32>
    %114 = arith.andi %109, %113 : vector<1x256xi1>
    %cst_46 = arith.constant 0.000000e+00 : f32
    %115 = vector.shape_cast %114 : vector<1x256xi1> to vector<1x256xi1>
    %116 = vector.broadcast %115 : vector<1x256xi1> to vector<4x256xi1>
    %117 = vector.broadcast %cst_46 : f32 to vector<4x256xf32>
    %118 = arith.select %116, %95, %117 : vector<4x256xi1>, vector<4x256xf32>
    %c3 = arith.constant 3 : index
    %c0_47 = arith.constant 0 : index
    %c0_48 = arith.constant 0 : index
    %119 = vector.load %arg3[%c3, %c0_47, %c0_48] : memref<9x8x4xbf16, #tpu.memory_space<vmem>>, vector<1x8x4xbf16>
    %120 = vector.shape_cast %119 : vector<1x8x4xbf16> to vector<8x4xbf16>
    %121 = arith.truncf %118 : vector<4x256xf32> to vector<4x256xbf16>
    %cst_49 = arith.constant dense<0.000000e+00> : vector<8x256xf32>
    %122 = tpu.matmul %120, %121, %cst_49 {dimension_numbers = #tpu.dot_dimension_numbers<[1], [0], [0], [1], [0, 0, 1, 1], [], []>} : vector<8x4xbf16>, vector<4x256xbf16>, vector<8x256xf32> -> vector<8x256xf32>
    %123 = arith.addf %94, %122 : vector<8x256xf32>
    %c4 = arith.constant 4 : index
    %c0_50 = arith.constant 0 : index
    %c0_51 = arith.constant 0 : index
    %124 = vector.load %arg3[%c4, %c0_50, %c0_51] : memref<9x8x4xbf16, #tpu.memory_space<vmem>>, vector<1x8x4xbf16>
    %125 = vector.shape_cast %124 : vector<1x8x4xbf16> to vector<8x4xbf16>
    %126 = arith.truncf %1 : vector<4x256xf32> to vector<4x256xbf16>
    %cst_52 = arith.constant dense<0.000000e+00> : vector<8x256xf32>
    %127 = tpu.matmul %125, %126, %cst_52 {dimension_numbers = #tpu.dot_dimension_numbers<[1], [0], [0], [1], [0, 0, 1, 1], [], []>} : vector<8x4xbf16>, vector<4x256xbf16>, vector<8x256xf32> -> vector<8x256xf32>
    %128 = arith.addf %123, %127 : vector<8x256xf32>
    %c255_i32 = arith.constant 255 : i32
    %129 = tpu.dynamic_rotate %1 by %c255_i32 dim 1 : vector<4x256xf32>, i32 -> vector<4x256xf32>
    %c1_i32_53 = arith.constant 1 : i32
    %130 = vector.broadcast %c1_i32_53 : i32 to vector<1x256xi32>
    %131 = arith.addi %4, %130 : vector<1x256xi32>
    %c0_i32_54 = arith.constant 0 : i32
    %132 = vector.broadcast %c0_i32_54 : i32 to vector<1x256xi32>
    %133 = arith.cmpi sge, %131, %132 : vector<1x256xi32>
    %c1_i32_55 = arith.constant 1 : i32
    %134 = vector.broadcast %c1_i32_55 : i32 to vector<1x256xi32>
    %135 = arith.addi %4, %134 : vector<1x256xi32>
    %c16_i32_56 = arith.constant 16 : i32
    %136 = vector.broadcast %c16_i32_56 : i32 to vector<1x256xi32>
    %137 = arith.cmpi slt, %135, %136 : vector<1x256xi32>
    %138 = arith.andi %133, %137 : vector<1x256xi1>
    %c0_i32_57 = arith.constant 0 : i32
    %139 = vector.broadcast %c0_i32_57 : i32 to vector<1x256xi32>
    %140 = arith.addi %6, %139 : vector<1x256xi32>
    %c0_i32_58 = arith.constant 0 : i32
    %141 = vector.broadcast %c0_i32_58 : i32 to vector<1x256xi32>
    %142 = arith.cmpi sge, %140, %141 : vector<1x256xi32>
    %143 = arith.andi %138, %142 : vector<1x256xi1>
    %c0_i32_59 = arith.constant 0 : i32
    %144 = vector.broadcast %c0_i32_59 : i32 to vector<1x256xi32>
    %145 = arith.addi %6, %144 : vector<1x256xi32>
    %c16_i32_60 = arith.constant 16 : i32
    %146 = vector.broadcast %c16_i32_60 : i32 to vector<1x256xi32>
    %147 = arith.cmpi slt, %145, %146 : vector<1x256xi32>
    %148 = arith.andi %143, %147 : vector<1x256xi1>
    %cst_61 = arith.constant 0.000000e+00 : f32
    %149 = vector.shape_cast %148 : vector<1x256xi1> to vector<1x256xi1>
    %150 = vector.broadcast %149 : vector<1x256xi1> to vector<4x256xi1>
    %151 = vector.broadcast %cst_61 : f32 to vector<4x256xf32>
    %152 = arith.select %150, %129, %151 : vector<4x256xi1>, vector<4x256xf32>
    %c5 = arith.constant 5 : index
    %c0_62 = arith.constant 0 : index
    %c0_63 = arith.constant 0 : index
    %153 = vector.load %arg3[%c5, %c0_62, %c0_63] : memref<9x8x4xbf16, #tpu.memory_space<vmem>>, vector<1x8x4xbf16>
    %154 = vector.shape_cast %153 : vector<1x8x4xbf16> to vector<8x4xbf16>
    %155 = arith.truncf %152 : vector<4x256xf32> to vector<4x256xbf16>
    %cst_64 = arith.constant dense<0.000000e+00> : vector<8x256xf32>
    %156 = tpu.matmul %154, %155, %cst_64 {dimension_numbers = #tpu.dot_dimension_numbers<[1], [0], [0], [1], [0, 0, 1, 1], [], []>} : vector<8x4xbf16>, vector<4x256xbf16>, vector<8x256xf32> -> vector<8x256xf32>
    %157 = arith.addf %128, %156 : vector<8x256xf32>
    %c241_i32 = arith.constant 241 : i32
    %158 = tpu.dynamic_rotate %1 by %c241_i32 dim 1 : vector<4x256xf32>, i32 -> vector<4x256xf32>
    %c-1_i32_65 = arith.constant -1 : i32
    %159 = vector.broadcast %c-1_i32_65 : i32 to vector<1x256xi32>
    %160 = arith.addi %4, %159 : vector<1x256xi32>
    %c0_i32_66 = arith.constant 0 : i32
    %161 = vector.broadcast %c0_i32_66 : i32 to vector<1x256xi32>
    %162 = arith.cmpi sge, %160, %161 : vector<1x256xi32>
    %c-1_i32_67 = arith.constant -1 : i32
    %163 = vector.broadcast %c-1_i32_67 : i32 to vector<1x256xi32>
    %164 = arith.addi %4, %163 : vector<1x256xi32>
    %c16_i32_68 = arith.constant 16 : i32
    %165 = vector.broadcast %c16_i32_68 : i32 to vector<1x256xi32>
    %166 = arith.cmpi slt, %164, %165 : vector<1x256xi32>
    %167 = arith.andi %162, %166 : vector<1x256xi1>
    %c1_i32_69 = arith.constant 1 : i32
    %168 = vector.broadcast %c1_i32_69 : i32 to vector<1x256xi32>
    %169 = arith.addi %6, %168 : vector<1x256xi32>
    %c0_i32_70 = arith.constant 0 : i32
    %170 = vector.broadcast %c0_i32_70 : i32 to vector<1x256xi32>
    %171 = arith.cmpi sge, %169, %170 : vector<1x256xi32>
    %172 = arith.andi %167, %171 : vector<1x256xi1>
    %c1_i32_71 = arith.constant 1 : i32
    %173 = vector.broadcast %c1_i32_71 : i32 to vector<1x256xi32>
    %174 = arith.addi %6, %173 : vector<1x256xi32>
    %c16_i32_72 = arith.constant 16 : i32
    %175 = vector.broadcast %c16_i32_72 : i32 to vector<1x256xi32>
    %176 = arith.cmpi slt, %174, %175 : vector<1x256xi32>
    %177 = arith.andi %172, %176 : vector<1x256xi1>
    %cst_73 = arith.constant 0.000000e+00 : f32
    %178 = vector.shape_cast %177 : vector<1x256xi1> to vector<1x256xi1>
    %179 = vector.broadcast %178 : vector<1x256xi1> to vector<4x256xi1>
    %180 = vector.broadcast %cst_73 : f32 to vector<4x256xf32>
    %181 = arith.select %179, %158, %180 : vector<4x256xi1>, vector<4x256xf32>
    %c6 = arith.constant 6 : index
    %c0_74 = arith.constant 0 : index
    %c0_75 = arith.constant 0 : index
    %182 = vector.load %arg3[%c6, %c0_74, %c0_75] : memref<9x8x4xbf16, #tpu.memory_space<vmem>>, vector<1x8x4xbf16>
    %183 = vector.shape_cast %182 : vector<1x8x4xbf16> to vector<8x4xbf16>
    %184 = arith.truncf %181 : vector<4x256xf32> to vector<4x256xbf16>
    %cst_76 = arith.constant dense<0.000000e+00> : vector<8x256xf32>
    %185 = tpu.matmul %183, %184, %cst_76 {dimension_numbers = #tpu.dot_dimension_numbers<[1], [0], [0], [1], [0, 0, 1, 1], [], []>} : vector<8x4xbf16>, vector<4x256xbf16>, vector<8x256xf32> -> vector<8x256xf32>
    %186 = arith.addf %157, %185 : vector<8x256xf32>
    %c240_i32 = arith.constant 240 : i32
    %187 = tpu.dynamic_rotate %1 by %c240_i32 dim 1 : vector<4x256xf32>, i32 -> vector<4x256xf32>
    %c0_i32_77 = arith.constant 0 : i32
    %188 = vector.broadcast %c0_i32_77 : i32 to vector<1x256xi32>
    %189 = arith.addi %4, %188 : vector<1x256xi32>
    %c0_i32_78 = arith.constant 0 : i32
    %190 = vector.broadcast %c0_i32_78 : i32 to vector<1x256xi32>
    %191 = arith.cmpi sge, %189, %190 : vector<1x256xi32>
    %c0_i32_79 = arith.constant 0 : i32
    %192 = vector.broadcast %c0_i32_79 : i32 to vector<1x256xi32>
    %193 = arith.addi %4, %192 : vector<1x256xi32>
    %c16_i32_80 = arith.constant 16 : i32
    %194 = vector.broadcast %c16_i32_80 : i32 to vector<1x256xi32>
    %195 = arith.cmpi slt, %193, %194 : vector<1x256xi32>
    %196 = arith.andi %191, %195 : vector<1x256xi1>
    %c1_i32_81 = arith.constant 1 : i32
    %197 = vector.broadcast %c1_i32_81 : i32 to vector<1x256xi32>
    %198 = arith.addi %6, %197 : vector<1x256xi32>
    %c0_i32_82 = arith.constant 0 : i32
    %199 = vector.broadcast %c0_i32_82 : i32 to vector<1x256xi32>
    %200 = arith.cmpi sge, %198, %199 : vector<1x256xi32>
    %201 = arith.andi %196, %200 : vector<1x256xi1>
    %c1_i32_83 = arith.constant 1 : i32
    %202 = vector.broadcast %c1_i32_83 : i32 to vector<1x256xi32>
    %203 = arith.addi %6, %202 : vector<1x256xi32>
    %c16_i32_84 = arith.constant 16 : i32
    %204 = vector.broadcast %c16_i32_84 : i32 to vector<1x256xi32>
    %205 = arith.cmpi slt, %203, %204 : vector<1x256xi32>
    %206 = arith.andi %201, %205 : vector<1x256xi1>
    %cst_85 = arith.constant 0.000000e+00 : f32
    %207 = vector.shape_cast %206 : vector<1x256xi1> to vector<1x256xi1>
    %208 = vector.broadcast %207 : vector<1x256xi1> to vector<4x256xi1>
    %209 = vector.broadcast %cst_85 : f32 to vector<4x256xf32>
    %210 = arith.select %208, %187, %209 : vector<4x256xi1>, vector<4x256xf32>
    %c7 = arith.constant 7 : index
    %c0_86 = arith.constant 0 : index
    %c0_87 = arith.constant 0 : index
    %211 = vector.load %arg3[%c7, %c0_86, %c0_87] : memref<9x8x4xbf16, #tpu.memory_space<vmem>>, vector<1x8x4xbf16>
    %212 = vector.shape_cast %211 : vector<1x8x4xbf16> to vector<8x4xbf16>
    %213 = arith.truncf %210 : vector<4x256xf32> to vector<4x256xbf16>
    %cst_88 = arith.constant dense<0.000000e+00> : vector<8x256xf32>
    %214 = tpu.matmul %212, %213, %cst_88 {dimension_numbers = #tpu.dot_dimension_numbers<[1], [0], [0], [1], [0, 0, 1, 1], [], []>} : vector<8x4xbf16>, vector<4x256xbf16>, vector<8x256xf32> -> vector<8x256xf32>
    %215 = arith.addf %186, %214 : vector<8x256xf32>
    %c239_i32 = arith.constant 239 : i32
    %216 = tpu.dynamic_rotate %1 by %c239_i32 dim 1 : vector<4x256xf32>, i32 -> vector<4x256xf32>
    %c1_i32_89 = arith.constant 1 : i32
    %217 = vector.broadcast %c1_i32_89 : i32 to vector<1x256xi32>
    %218 = arith.addi %4, %217 : vector<1x256xi32>
    %c0_i32_90 = arith.constant 0 : i32
    %219 = vector.broadcast %c0_i32_90 : i32 to vector<1x256xi32>
    %220 = arith.cmpi sge, %218, %219 : vector<1x256xi32>
    %c1_i32_91 = arith.constant 1 : i32
    %221 = vector.broadcast %c1_i32_91 : i32 to vector<1x256xi32>
    %222 = arith.addi %4, %221 : vector<1x256xi32>
    %c16_i32_92 = arith.constant 16 : i32
    %223 = vector.broadcast %c16_i32_92 : i32 to vector<1x256xi32>
    %224 = arith.cmpi slt, %222, %223 : vector<1x256xi32>
    %225 = arith.andi %220, %224 : vector<1x256xi1>
    %c1_i32_93 = arith.constant 1 : i32
    %226 = vector.broadcast %c1_i32_93 : i32 to vector<1x256xi32>
    %227 = arith.addi %6, %226 : vector<1x256xi32>
    %c0_i32_94 = arith.constant 0 : i32
    %228 = vector.broadcast %c0_i32_94 : i32 to vector<1x256xi32>
    %229 = arith.cmpi sge, %227, %228 : vector<1x256xi32>
    %230 = arith.andi %225, %229 : vector<1x256xi1>
    %c1_i32_95 = arith.constant 1 : i32
    %231 = vector.broadcast %c1_i32_95 : i32 to vector<1x256xi32>
    %232 = arith.addi %6, %231 : vector<1x256xi32>
    %c16_i32_96 = arith.constant 16 : i32
    %233 = vector.broadcast %c16_i32_96 : i32 to vector<1x256xi32>
    %234 = arith.cmpi slt, %232, %233 : vector<1x256xi32>
    %235 = arith.andi %230, %234 : vector<1x256xi1>
    %cst_97 = arith.constant 0.000000e+00 : f32
    %236 = vector.shape_cast %235 : vector<1x256xi1> to vector<1x256xi1>
    %237 = vector.broadcast %236 : vector<1x256xi1> to vector<4x256xi1>
    %238 = vector.broadcast %cst_97 : f32 to vector<4x256xf32>
    %239 = arith.select %237, %216, %238 : vector<4x256xi1>, vector<4x256xf32>
    %c8 = arith.constant 8 : index
    %c0_98 = arith.constant 0 : index
    %c0_99 = arith.constant 0 : index
    %240 = vector.load %arg3[%c8, %c0_98, %c0_99] : memref<9x8x4xbf16, #tpu.memory_space<vmem>>, vector<1x8x4xbf16>
    %241 = vector.shape_cast %240 : vector<1x8x4xbf16> to vector<8x4xbf16>
    %242 = arith.truncf %239 : vector<4x256xf32> to vector<4x256xbf16>
    %cst_100 = arith.constant dense<0.000000e+00> : vector<8x256xf32>
    %243 = tpu.matmul %241, %242, %cst_100 {dimension_numbers = #tpu.dot_dimension_numbers<[1], [0], [0], [1], [0, 0, 1, 1], [], []>} : vector<8x4xbf16>, vector<4x256xbf16>, vector<8x256xf32> -> vector<8x256xf32>
    %244 = arith.addf %215, %243 : vector<8x256xf32>
    %c0_101 = arith.constant 0 : index
    %c0_102 = arith.constant 0 : index
    %245 = vector.load %arg4[%c0_101, %c0_102] : memref<8x1xf32, #tpu.memory_space<vmem>>, vector<8x1xf32>
    %246 = vector.broadcast %245 : vector<8x1xf32> to vector<8x256xf32>
    %247 = arith.addf %244, %246 : vector<8x256xf32>
    %248 = arith.negf %247 : vector<8x256xf32>
    %249 = math.exp %248 : vector<8x256xf32>
    %cst_103 = arith.constant 1.000000e+00 : f32
    %250 = vector.broadcast %cst_103 : f32 to vector<8x256xf32>
    %251 = arith.addf %250, %249 : vector<8x256xf32>
    %252 = arith.divf %250, %251 : vector<8x256xf32>
    %c0_104 = arith.constant 0 : index
    %c0_105 = arith.constant 0 : index
    %c0_106 = arith.constant 0 : index
    %253 = vector.load %arg7[%c0_104, %c0_105, %c0_106] : memref<1x8x256xf32, #tpu.memory_space<vmem>>, vector<1x8x256xf32>
    %254 = vector.shape_cast %253 : vector<1x8x256xf32> to vector<8x256xf32>
    %255 = vector.shape_cast %252 : vector<8x256xf32> to vector<1x8x256xf32>
    tpu.vector_store %arg7[%c0_104, %c0_105, %c0_106], %255 {strides = array<i32>} : memref<1x8x256xf32, #tpu.memory_space<vmem>>, vector<1x8x256xf32>,
    %c0_107 = arith.constant 0 : index
    %c0_108 = arith.constant 0 : index
    %256 = vector.load %arg5[%c0_107, %c0_108] : memref<40x64xbf16, #tpu.memory_space<vmem>>, vector<40x64xbf16>
    %c0_109 = arith.constant 0 : index
    %c0_110 = arith.constant 0 : index
    %c0_111 = arith.constant 0 : index
    %257 = vector.load %arg2[%c0_109, %c0_110, %c0_111] : memref<1x64x16xbf16, #tpu.memory_space<vmem>>, vector<1x64x16xbf16>
    %258 = vector.shape_cast %257 : vector<1x64x16xbf16> to vector<64x16xbf16>
    %cst_112 = arith.constant dense<0.000000e+00> : vector<40x16xf32>
    %259 = tpu.matmul %256, %258, %cst_112 {dimension_numbers = #tpu.dot_dimension_numbers<[1], [0], [0], [1], [0, 0, 1, 1], [], []>} : vector<40x64xbf16>, vector<64x16xbf16>, vector<40x16xf32> -> vector<40x16xf32>
    %c0_113 = arith.constant 0 : index
    %c0_114 = arith.constant 0 : index
    %260 = vector.load %arg6[%c0_113, %c0_114] : memref<40x1xf32, #tpu.memory_space<vmem>>, vector<40x1xf32>
    %261 = vector.broadcast %260 : vector<40x1xf32> to vector<40x16xf32>
    %262 = arith.addf %259, %261 : vector<40x16xf32>
    %cst_115 = arith.constant dense<0xFF800000> : vector<16xf32>
    %263 = vector.multi_reduction <maximumf>, %262, %cst_115 [0] : vector<40x16xf32> to vector<16xf32>
    %264 = vector.shape_cast %263 : vector<16xf32> to vector<1x16xf32>
    %265 = tpu.iota {dimensions = array<i32: 0>} : vector<40x16xi32>
    %266 = arith.sitofp %265 : vector<40x16xi32> to vector<40x16xf32>
    %267 = vector.broadcast %264 : vector<1x16xf32> to vector<40x16xf32>
    %268 = arith.cmpf oge, %262, %267 : vector<40x16xf32>
    %cst_116 = arith.constant 4.000000e+01 : f32
    %269 = vector.broadcast %cst_116 : f32 to vector<40x16xf32>
    %270 = arith.select %268, %266, %269 : vector<40x16xi1>, vector<40x16xf32>
    %cst_117 = arith.constant dense<0x7F800000> : vector<16xf32>
    %271 = vector.multi_reduction <minimumf>, %270, %cst_117 [0] : vector<40x16xf32> to vector<16xf32>
    %272 = vector.shape_cast %271 : vector<16xf32> to vector<1x16xf32>
    %273 = arith.fptosi %272 : vector<1x16xf32> to vector<1x16xi32>
    %c0_118 = arith.constant 0 : index
    %c0_119 = arith.constant 0 : index
    %c0_120 = arith.constant 0 : index
    %274 = vector.load %arg8[%c0_118, %c0_119, %c0_120] : memref<1x1x16xi32, #tpu.memory_space<vmem>>, vector<1x1x16xi32>
    %275 = vector.shape_cast %274 : vector<1x1x16xi32> to vector<1x16xi32>
    %276 = vector.shape_cast %273 : vector<1x16xi32> to vector<1x1x16xi32>
    tpu.vector_store %arg8[%c0_118, %c0_119, %c0_120], %276 {strides = array<i32>} : memref<1x1x16xi32, #tpu.memory_space<vmem>>, vector<1x1x16xi32>,
    return
  }
  func.func @transform_0(%arg0: i32) -> (i32, i32, i32) {
    %c0_i32 = arith.constant 0 : i32
    %c0_i32_0 = arith.constant 0 : i32
    %c0_i32_1 = arith.constant 0 : i32
    return %arg0, %c0_i32, %c0_i32_0 : i32, i32, i32
  }
  func.func @transform_1(%arg0: i32) -> (i32, i32, i32) {
    %c0_i32 = arith.constant 0 : i32
    %c0_i32_0 = arith.constant 0 : i32
    %c0_i32_1 = arith.constant 0 : i32
    return %arg0, %c0_i32, %c0_i32_0 : i32, i32, i32
  }
  func.func @transform_2(%arg0: i32) -> (i32, i32, i32) {
    %c0_i32 = arith.constant 0 : i32
    %c0_i32_0 = arith.constant 0 : i32
    %c0_i32_1 = arith.constant 0 : i32
    %c0_i32_2 = arith.constant 0 : i32
    return %c0_i32, %c0_i32_0, %c0_i32_1 : i32, i32, i32
  }
  func.func @transform_3(%arg0: i32) -> (i32, i32) {
    %c0_i32 = arith.constant 0 : i32
    %c0_i32_0 = arith.constant 0 : i32
    %c0_i32_1 = arith.constant 0 : i32
    return %c0_i32, %c0_i32_0 : i32, i32
  }
  func.func @transform_4(%arg0: i32) -> (i32, i32) {
    %c0_i32 = arith.constant 0 : i32
    %c0_i32_0 = arith.constant 0 : i32
    %c0_i32_1 = arith.constant 0 : i32
    return %c0_i32, %c0_i32_0 : i32, i32
  }
  func.func @transform_5(%arg0: i32) -> (i32, i32) {
    %c0_i32 = arith.constant 0 : i32
    %c0_i32_0 = arith.constant 0 : i32
    %c0_i32_1 = arith.constant 0 : i32
    return %c0_i32, %c0_i32_0 : i32, i32
  }
  func.func @transform_6(%arg0: i32) -> (i32, i32, i32) {
    %c0_i32 = arith.constant 0 : i32
    %c0_i32_0 = arith.constant 0 : i32
    %c0_i32_1 = arith.constant 0 : i32
    return %arg0, %c0_i32, %c0_i32_0 : i32, i32, i32
  }
  func.func @transform_7(%arg0: i32) -> (i32, i32, i32) {
    %c0_i32 = arith.constant 0 : i32
    %c0_i32_0 = arith.constant 0 : i32
    %c0_i32_1 = arith.constant 0 : i32
    return %arg0, %c0_i32, %c0_i32_0 : i32, i32, i32
  }
}

</mosaic_0001>

<bundles_post_ra>
// kernel: ocr_infer.1
= control target key start
LH: loop header
LB: loop body
LE: loop exit
PB: predicated region body
PF: predicated region fallthrough
CT: control target
= control target key end

     0   :  { %13 = vsyncpa [#allocation3], 0  ;;  %s2130_s0 = inlined_call_operand.vmem [shape: f32[2,4,256], index: 0, kind: input, shape index: {}]   ;;  %s2131_s1 = inlined_call_operand.vmem [shape: bf16[2,64,16], index: 1, kind: input, shape index: {}]   ;;  %s2132_s2 = inlined_call_operand.vmem [shape: bf16[9,8,4], index: 2, kind: input, shape index: {}]   ;;  %s2133_s3 = inlined_call_operand.vmem [shape: f32[8,1], index: 3, kind: input, shape index: {}]   ;;  %s2134_s4 = inlined_call_operand.vmem [shape: bf16[40,64], index: 4, kind: input, shape index: {}]   ;;  %s2135_s5 = inlined_call_operand.vmem [shape: f32[40,1], index: 5, kind: input, shape index: {}]   ;;  %s2136_s6 = inlined_call_operand.vmem [shape: f32[2,8,256], index: 6, kind: output, shape index: {0}]   ;;  %s2137_s7 = inlined_call_operand.hbm [shape: s32[2,1,16], index: 7, kind: output, shape index: {1}]  }
   0x1   :  { %15 = vsyncpa [#allocation3 + $0x1], 0  ;;  %s1639_s24 = smov 0   ;;  %s1641_s25 = smov 0  }
   0x2   :  { %s1643_s26 = smov 0   ;;  %s1645_s27 = smov 0  }
   0x3 LB: > { %s1660_s28 = sadd.s32 4294967295, %s1585_s27   ;;  %s1332_s29 = sadd.s32 4294967294, %s1585_s27   ;;  %s1585_s27 = sphi %s1645_s27, %s2230_s27   ;;  %s1581_s26 = sphi %s1643_s26, %s2229_s26   ;;  %s1577_s25 = sphi %s1641_s25, %s2228_s25   ;;  %s1573_s24 = sphi %s1639_s24, %s2227_s24  }
   0x4   : > { %s1664_s30 = sadd.s32 1, %s1585_s27   ;;  %s190_s8 = sadd.s32 1, %s1581_s26 }
   0x5   : > { %s187_s9 = ssub.s32 %s1585_s27, %s1664_s30  ;;  %p200_p0 = scmp.ne.s32.totalorder %s1581_s26, %s1577_s25 }
   0x6   : > { %p188_p1 = scmp.eq.s32.totalorder %s187_s9, 0  ;;  %p201_p2 = scmp.eq.s32.totalorder %s1660_s28, 1 }
   0x7   : > { %p206_p3 = scmp.ne.s32.totalorder %s1577_s25, %s1573_s24  ;;  %p207_p4 = scmp.eq.s32.totalorder %s1332_s29, 1 }
   0x8   : > { %s1675_s10 = scalar_select %p188_p1, %s1581_s26, %s190_s8  }
   0x9   : > { %p1677_p5 = por %p201_p2, %p200_p0  ;;  %p1681_p6 = por %p207_p4, %p206_p3 }
   0xa   : > { %p1335_p7 = scmp.ge.s32.totalorder %s1585_s27, 1  ;;  %p253_p8 = scmp.lt.s32.totalorder %s1585_s27, 3 }
   0xc   : > { %p254_p9 = pnand %p1335_p7, %p253_p8 }
   0xd   : > { %p294_p10 = scmp.lt.s32.totalorder (!%p254_p9), %s1660_s28, 1  ;;  %v1587_v2 = vmov (!%p254_p9), 0   ;;  %s1588_s18 = smov (!%p254_p9), 112   ;;  %v1035_v4 = vld [vmem:[%s2135_s5 + $0x20] sm:$0xff] (!%p254_p9)  ;;  %v1032_v6 = vld [vmem:[%s2135_s5 + $0x8] sm:$0xff] (!%p254_p9)  ;;  %v1033_v7 = vld [vmem:[%s2135_s5 + $0x10] sm:$0xff] (!%p254_p9)  ;;  %v311_v10 = vlaneseq (!%p254_p9) }
   0xe   : > { %257 = sbr.rel (%p254_p9) target bundleno = 486 (0x1e6), region = 44  ;;  %631 = vmatprep.mubr.bf16.mxu1 (!%p254_p9), %v1587_v2  ;;  %425 = vmatprep.mubr.bf16.mxu0 (!%p254_p9), %v1587_v2  ;;  %s1589_s19 = smov (!%p254_p9), 1   ;;  %v1031_v5 = vld [vmem:[%s2135_s5] sm:$0xff] (!%p254_p9)  ;;  %v1034_v8 = vld [vmem:[%s2135_s5 + $0x18] sm:$0xff] (!%p254_p9)  ;;  %v1356_v46 = vld [vmem:[%s2132_s2 + $0x14] sm:$0xf] (!%p254_p9) }
   0xf   : > { %1506 = vset.pattern.permute.xlu1 (!%p254_p9), %v1587_v2  ;;  %1505 = vset.pattern.permute.xlu0 (!%p254_p9), %v1587_v2  ;;  %s1590_s20 = smov (!%p254_p9), 16   ;;  %s1591_s21 = smov (!%p254_p9), 127   ;;  %v996_v9 = vld [vmem:[%s2133_s3] sm:$0xff] (!%p254_p9)  ;;  %v1732_v11 = vand.u32 (!%p254_p9), 127, %v311_v10  ;;  %v1596_v55 = vmov (!%p254_p9), 0.0  }
  0x10   : > { %s1592_s22 = smov (!%p254_p9), 17   ;;  %s1593_s23 = smov (!%p254_p9), 15  }
  0x11   : > { %s1594_s15 = smov (!%p254_p9), 113   ;;  %s1595_s16 = smov (!%p254_p9), 111   ;;  %v313_v12 = vadd.s32 (!%p254_p9), 128, %v1732_v11  ;;  %v314_v16 = vand.u32 (!%p254_p9), 15, %v1732_v11  ;;  %v316_v19 = vshra.s32 (!%p254_p9), %v1732_v11, 4 }
  0x13   : > { %v315_v13 = vand.u32 (!%p254_p9), 15, %v313_v12  ;;  %v317_v14 = vshra.s32 (!%p254_p9), %v313_v12, 4  ;;  %v1744_v20 = vadd.s32 (!%p254_p9), 4294967295, %v314_v16  ;;  %v1747_v21 = vadd.s32 (!%p254_p9), 1, %v314_v16  ;;  %v1350_v12 = vld [vmem:[%s2132_s2 + $0xc] sm:$0xf] (!%p254_p9) }
  0x14   : > { %vm572_vm9 = vcmp.ge.s32.totalorder (!%p254_p9), %v316_v19, 0  ;;  %vm576_vm15 = vcmp.lt.s32.totalorder (!%p254_p9), %v316_v19, 16  ;;  %v1784_v27 = vadd.s32 (!%p254_p9), 4294967295, %v316_v19  ;;  %v1791_v28 = vadd.s32 (!%p254_p9), 1, %v316_v19 }
  0x15   : > { %s1689_s13 = scalar_select %p294_p10, %s1660_s28, 1  ;;  %v1735_v15 = vadd.s32 4294967295, %v315_v13  ;;  %v1738_v17 = vadd.s32 1, %v315_v13  ;;  %v1740_v18 = vadd.s32 1, %v317_v14  ;;  %vm573_vm1 = vcmp.ge.s32.totalorder %v317_v14, 0 }
  0x16   : > { %vm577_vm6 = vcmp.lt.s32.totalorder %v317_v14, 16  ;;  %vm2141_vm8 = vcmp.ge.s32.totalorder %v1744_v20, 0  ;;  %v1756_v22 = vadd.s32 4294967295, %v317_v14  ;;  %vm2140_vm11 = vcmp.lt.s32.totalorder %v1747_v21, 16 }
  0x17   : > { %s1383_s14 = sshll.u32 %s1689_s13, 3  ;;  %s1384_s29 = sshll.u32 %s1689_s13, 5  ;;  %vm2142_vm0 = vcmp.ge.s32.totalorder %v1735_v15, 0  ;;  %vm2143_vm2 = vcmp.lt.s32.totalorder %v1738_v17, 16  ;;  %vm2139_vm3 = vcmp.ge.s32.totalorder %v1740_v18, 0  ;;  %vm2138_vm4 = vcmp.lt.s32.totalorder %v1740_v18, 16  ;;  %vm574_vm14 = vmand %vm2141_vm8, %vm572_vm9 }
  0x18   : > { %s298_s17 = scalar_lea.vmem %s2130_s0, %s1383_s14  ;;  %s1711_s14 = scalar_lea.vmem %s2131_s1, %s1384_s29  ;;  %vm575_vm5 = vmand %vm2142_vm0, %vm573_vm1  ;;  %vm338_vm8 = vcmp.ge.s32.totalorder %v1784_v27, 0 }
  0x19   : > { %v1695_v0 = vld [vmem:[%s298_s17] sm:$0xff]  ;;  %vm706_vm7 = vmand %vm2143_vm2, %vm573_vm1  ;;  %vm2146_vm2 = vcmp.lt.s32.totalorder %v1784_v27, 16 }
  0x1a   : > { %v1699_v1 = vcombine.high %v1695_v0, %v1695_v0  ;;  %vm1762_vm10 = vmand %vm2139_vm3, %vm2138_vm4  ;;  %vm2144_vm4 = vcmp.ge.s32.totalorder %v1756_v22, 0  ;;  %vm569_vm3 = vcmp.lt.s32.totalorder %v1732_v11, 1 }
  0x1b   : > { %vm1767_vm12 = vmand %vm575_vm5, %vm577_vm6  ;;  %vm854_vm5 = vcmp.lt.s32.totalorder %v1732_v11, 112 }
  0x1c   : > { %v1475_v3 = vpack.i.bf16 %v1699_v1, %v1695_v0  ;;  %vm1771_vm13 = vmand %vm706_vm7, %vm577_vm6  ;;  %vm2145_vm6 = vcmp.lt.s32.totalorder %v1756_v22, 16 }
  0x1d   : > { %vm1779_vm1 = vmand %vm2140_vm11, %vm572_vm9 }
  0x1e   : > { %1476 = vrot.lane.b32.xlu1 %v1475_v3, %s1588_s18  ;;  %1466 = vrot.lane.b32.xlu0 %v1475_v3, %s1589_s19  ;;  %vm341_vm7 = vmand %vm2142_vm0, %vm2144_vm4  ;;  %vm2167_vm4 = vcmp.lt.s32.totalorder %v1738_v17, 16 }
  0x1f   : > { %vm1796_vm11 = vmand %vm574_vm14, %vm576_vm15 }
  0x20   : > { %vm1805_vm0 = vmand %vm1779_vm1, %vm576_vm15  ;;  %vm2163_vm15 = vcmp.ge.s32.totalorder %v1756_v22, 0 }
  0x21   : > { %vm1811_vm14 = vmand %vm341_vm7, %vm2145_vm6  ;;  %vm780_vm7 = vcmp.ge.s32.totalorder %v1791_v28, 0 }
  0x22   : > { %1481 = vrot.lane.b32.xlu1 %v1475_v3, %s1590_s20  ;;  %1471 = vrot.lane.b32.xlu0 %v1475_v3, %s1591_s21  ;;  %vm1828_vm1 = vmand %vm2163_vm15, %vm2145_vm6  ;;  %vm784_vm6 = vcmp.lt.s32.totalorder %v1791_v28, 16  ;;  %s1380_s20 = sshll.u32 %s1660_s28, 4  ;;  %s1598_s28 = smov [#allocation2]  }
  0x23   : > { %s2088_s29 = scalar_lea.hbm %s2137_s7, %s1380_s20 }
  0x26   : > { %1486 = vrot.lane.b32.xlu0 %v1475_v3, %s1592_s22  ;;  %1491 = vrot.lane.b32.xlu1 %v1475_v3, %s1593_s23 }
  0x2a   : > { %1496 = vrot.lane.b32.xlu0 %v1475_v3, %s1594_s15  ;;  %1501 = vrot.lane.b32.xlu1 %v1475_v3, %s1595_s16  ;;  %s1385_s16 = sshll.u32 %s1689_s13, 4  ;;  %s292_s13 = sand.u32 1, %s1577_s25  }
  0x2b   : > { %s308_s19 = scalar_lea.vmem %s2136_s6, %s1385_s16  ;;  %s1225_s8 = scalar_lea.sflag [#allocation3], %s292_s13 }
  0x2c   : > { %s1527_s15 = sshll.u32 %s1598_s28, 4  ;;  %s1528_s15 = int_to_ptr.vmem [resolvable:$false] %s1527_s15 }
  0x2d   : > { %s1529_s16 = scalar_lea.vmem %s1528_s15, 32 }
  0x2e   : > { %1058 = vperm.xlu1 %1506, %v1035_v4   ;;  %1038 = vperm.xlu0 %1505, %v1031_v5  }
  0x32   : > { %1043 = vperm.xlu1 %1506, %v1032_v6   ;;  %1048 = vperm.xlu0 %1505, %v1033_v7  }
  0x36   : > { %1053 = vperm.xlu1 %1506, %v1034_v8   ;;  %999 = vperm.xlu0 %1505, %v996_v9  }
  0x90   : > { %v1477_v29 = vpop.permute.xlu1 %1476  ;;  %v1467_v30 = vpop.permute.xlu0 %1466 }
  0x91   : > { %v1479_v32 = vunpack.i.h.bf16 %v1477_v29  ;;  %v1478_v33 = vunpack.i.l.bf16 %v1477_v29  ;;  %v1469_v34 = vunpack.i.h.bf16 %v1467_v30  ;;  %v1468_v35 = vunpack.i.l.bf16 %v1467_v30 }
  0x93   : > { %v856_v38 = vsel %vm854_vm5, %v1479_v32, %v1478_v33  ;;  %v570_v39 = vsel %vm569_vm3, %v1468_v35, %v1469_v34  ;;  %v571_v40 = vsel %vm569_vm3, %v1469_v34, %v1468_v35  ;;  %vm2166_vm3 = vmmov %vm2163_vm15  ;;  %v855_v51 = vsel %vm854_vm5, %v1478_v33, %v1479_v32  ;;  %v1342_v34 = vld [vmem:[%s2132_s2 + $0x4] sm:$0xf] }
  0x94   : > { %v1482_v42 = vpop.permute.xlu1 %1481  ;;  %v1472_v43 = vpop.permute.xlu0 %1471  ;;  %v585_v44 = vsel %vm1767_vm12, %v570_v39, 0.0  ;;  %v584_v45 = vsel %vm1796_vm11, %v571_v40, 0.0  ;;  %vm1841_vm9 = vmand %vm2167_vm4, %vm2166_vm3  ;;  %v866_v52 = vsel %vm1762_vm10, %v856_v38, 0.0  ;;  %vm2170_vm4 = vcmp.ge.s32.totalorder %v1744_v20, 0 }
  0x95   : > { %v1484_v47 = vunpack.i.h.bf16 %v1482_v42  ;;  %v1483_v48 = vunpack.i.l.bf16 %v1482_v42  ;;  %v1474_v49 = vunpack.i.h.bf16 %v1472_v43  ;;  %v1473_v50 = vunpack.i.l.bf16 %v1472_v43  ;;  %vm370_vm11 = vmand %vm338_vm8, %vm2146_vm2 }
  0x96   : > { %v589_v53 = vpack.c.bf16 %v585_v44, %v585_v44  ;;  %v588_v54 = vpack.c.bf16 %v584_v45, %v584_v45  ;;  %vm1859_vm12 = vmand %vm2170_vm4, %vm338_vm8  ;;  %vm2173_vm3 = vcmp.lt.s32.totalorder %v1732_v11, 127  ;;  %vm2175_vm5 = vcmp.lt.s32.totalorder %v1732_v11, 16 }
  0x97   : > { %v703_v56 = vsel %vm2173_vm3, %v1473_v50, %v1474_v49  ;;  %vm2174_vm15 = vmmov %vm2173_vm3  ;;  %v360_v58 = vsel %vm2175_vm5, %v1483_v48, %v1484_v47  ;;  %vm2179_vm2 = vcmask 1041408   ;;  %vm2181_vm3 = vcmp.lt.s32.totalorder %v1747_v21, 16 }
  0x98   : > { %v704_v57 = vsel %vm2174_vm15, %v1474_v49, %v1473_v50  ;;  %vm2176_vm10 = vmmov %vm2175_vm5  ;;  %1351 = vmatprep.subr.msk.bf16.mxu1 %vm2179_vm2, %v589_v53  ;;  %v377_v63 = vsel %vm1828_vm1, %v360_v58, 0.0  ;;  %v1487_v4 = vpop.permute.xlu0 %1486  ;;  %v1492_v5 = vpop.permute.xlu1 %1491  ;;  %v713_v19 = vsel %vm1805_vm0, %v703_v56, 0.0  ;;  %v870_v29 = vpack.c.bf16 %v866_v52, %v866_v52  ;;  %v352_v52 = vld [vmem:[%s2132_s2] sm:$0xf] }
  0x99   : > { %v361_v59 = vsel %vm2176_vm10, %v1484_v47, %v1483_v48  ;;  %vm1875_vm4 = vmand %vm780_vm7, %vm784_vm6  ;;  %v714_v61 = vsel %vm1771_vm13, %v704_v57, 0.0  ;;  %v381_v8 = vpack.c.bf16 %v377_v63, %v377_v63  ;;  %v1489_v14 = vunpack.i.h.bf16 %v1487_v4  ;;  %v1508_v57 = vld [vmem:[%s1711_s14] sm:$0xff]  }
  0x9a   : > { %vm2180_vm15 = vmmov %vm2179_vm2  ;;  %v376_v3 = vsel %vm370_vm11, %v361_v59, 0.0  ;;  %v718_v7 = vpack.c.bf16 %v714_v61, %v714_v61  ;;  %vm2184_vm2 = vcmp.lt.s32.totalorder %v1756_v22, 16  ;;  %v1488_v16 = vunpack.i.l.bf16 %v1487_v4 }
  0x9b   : > { %v594_v62 = vsel %vm2180_vm15, %v588_v54, 0  ;;  %vm1889_vm5 = vmand %vm2181_vm3, %vm338_vm8  ;;  %v380_v13 = vpack.c.bf16 %v376_v3, %v376_v3  ;;  %v1494_v23 = vunpack.i.h.bf16 %v1492_v5  ;;  %v1493_v24 = vunpack.i.l.bf16 %v1492_v5  ;;  %v1510_v5 = vld [vmem:[%s1711_s14 + $0x10] sm:$0xff]  }
  0x9c   : > { %600 = vmatpush1.bf16.msra.mxu1 %v594_v62  ;;  %vm1897_vm13 = vmand %vm1841_vm9, %vm2184_vm2  ;;  %vm2187_vm8 = vcmp.lt.s32.totalorder %v1784_v27, 16  ;;  %v717_v26 = vpack.c.bf16 %v713_v19, %v713_v19  ;;  %v865_v30 = vsel %vm1875_vm4, %v855_v51, 0.0  ;;  %vm2197_vm3 = vcmp.lt.s32.totalorder %v1732_v11, 17  ;;  %v1497_v45 = vpop.permute.xlu0 %1496  ;;  %v1502_v56 = vpop.permute.xlu1 %1501  ;;  %v1513_v19 = vld [vmem:[%s2134_s4 + $0x8] sm:$0xff]  }
  0x9d   : > { %vm1910_vm9 = vmand %vm1859_vm12, %vm2187_vm8  ;;  %vm2196_vm12 = vcmask 31744   ;;  %v326_v32 = vsel %vm2197_vm3, %v1488_v16, %v1489_v14  ;;  %vm2199_vm4 = vcmp.lt.s32.totalorder %v1732_v11, 15  ;;  %v869_v42 = vpack.c.bf16 %v865_v30, %v865_v30 }
  0x9e   : > { %vm2190_vm1 = vmmov %vm2180_vm15  ;;  %v489_v27 = vsel %vm2199_vm4, %v1493_v24, %v1494_v23  ;;  %v351_v35 = vsel %vm1811_vm14, %v326_v32, 0.0  ;;  %v1499_v50 = vunpack.i.h.bf16 %v1497_v45  ;;  %v1498_v51 = vunpack.i.l.bf16 %v1497_v45 }
  0x9f   : > { %1343 = vmatprep.subr.msk.bf16.mxu0 %vm2190_vm1, %v381_v8  ;;  %vm2191_vm11 = vmmov %vm2190_vm1  ;;  %1352 = vmatmul.mubr.msk.bf16.vlgmr.msra.gmra.mrb[0].mxu1 %vm2196_vm12, %v1350_v12  ;;  %v508_v39 = vsel %vm1897_vm13, %v489_v27, 0.0  ;;  %v354_v40 = vpack.c.bf16 %v351_v35, %v351_v35  ;;  %v645_v54 = vpack.c.bf16 %v1699_v1, %v1699_v1  ;;  %v1362_v1 = vld [vmem:[%s2132_s2 + $0x1c] sm:$0xf]  ;;  %v644_v58 = vpack.c.bf16 %v1695_v0, %v1695_v0  ;;  %v1509_v0 = vld [vmem:[%s1711_s14 + $0x8] sm:$0xff]  }
  0xa0   : > { %1357 = vmatprep.subr.msk.bf16.mxu1 %vm2191_vm11, %v718_v7  ;;  %vm2192_vm10 = vmmov %vm2190_vm1  ;;  %760 = vmatprep.mubr.bf16.mxu1 %v1587_v2  ;;  %v512_v44 = vpack.c.bf16 %v508_v39, %v508_v39  ;;  %v1504_v61 = vunpack.i.h.bf16 %v1502_v56  ;;  %v1503_v62 = vunpack.i.l.bf16 %v1502_v56  ;;  %v1353_v8 = vld [vmem:[%s2132_s2 + $0x10] sm:$0xf] }
  0xa1   : > { %v388_v25 = vsel %vm2192_vm10, %v380_v13, 0  ;;  %vm2193_vm0 = vmmov %vm2187_vm8 }
  0xa2   : > { %vm1923_vm15 = vmand %vm1889_vm5, %vm2193_vm0  ;;  %394 = vmatpush1.bf16.msra.mxu0 %v388_v25  ;;  %vm2207_vm0 = vcmp.ge.s32.totalorder %v1740_v18, 0 }
  0xa3   : > { %vm2198_vm2 = vmmov %vm2197_vm3 }
  0xa4   : > { %v327_v33 = vsel %vm2198_vm2, %v1489_v14, %v1488_v16  ;;  %vm2200_vm5 = vmmov %vm2190_vm1  ;;  %vm775_vm2 = vcmp.lt.s32.totalorder %v1732_v11, 113  ;;  %v1359_v14 = vld [vmem:[%s2132_s2 + $0x18] sm:$0xf] }
  0xa5   : > { %v723_v36 = vsel %vm2200_vm5, %v717_v26, 0  ;;  %vm2201_vm8 = vmmov %vm2199_vm4  ;;  %v350_v41 = vsel %vm1910_vm9, %v327_v33, 0.0  ;;  %v776_v60 = vsel %vm775_vm2, %v1498_v51, %v1499_v50 }
  0xa6   : > { %v490_v38 = vsel %vm2201_vm8, %v1494_v23, %v1493_v24  ;;  %729 = vmatpush1.bf16.msra.mxu1 %v723_v36  ;;  %vm2202_vm14 = vmmov %vm2196_vm12  ;;  %v353_v43 = vpack.c.bf16 %v350_v41, %v350_v41  ;;  %vm2212_vm8 = vcmp.lt.s32.totalorder %v1740_v18, 16  ;;  %v1365_v23 = vld [vmem:[%s2132_s2 + $0x20] sm:$0xf]  ;;  %v1514_v24 = vld [vmem:[%s2134_s4 + $0x10] ss:$0 sps:$4 sm:$0xff]  }
  0xa7   : > { %v507_v37 = vsel %vm1923_vm15, %v490_v38, 0.0  ;;  %1344 = vmatmul.mubr.msk.bf16.vlgmr.msra.gmra.mrb[0].mxu0 %vm2202_vm14, %v1342_v34  ;;  %1363 = vmatprep.subr.msk.bf16.mxu1 %vm2190_vm1, %v870_v29  ;;  %vm2203_vm11 = vmmov %vm2190_vm1  ;;  %vm2208_vm15 = vcmp.ge.s32.totalorder %v1735_v15, 0  ;;  %v777_v15 = vsel %vm775_vm2, %v1499_v50, %v1498_v51 }
  0xa8   : > { %1345 = vmatprep.subr.msk.bf16.mxu0 %vm2203_vm11, %v354_v40  ;;  %475 = vmatprep.mubr.bf16.mxu0 %v1587_v2  ;;  %vm2204_vm13 = vmmov %vm2190_vm1  ;;  %v511_v48 = vpack.c.bf16 %v507_v37, %v507_v37 }
  0xa9   : > { %v438_v47 = vsel %vm2204_vm13, %v353_v43, 0  ;;  %vm2205_vm9 = vmmov %vm2190_vm1 }
  0xaa   : > { %444 = vmatpush1.bf16.msra.mxu0 %v438_v47  ;;  %v875_v49 = vsel %vm2205_vm9, %v869_v42, 0  ;;  %vm2206_vm10 = vmmov %vm2190_vm1 }
  0xab   : > { %1348 = vmatprep.subr.msk.bf16.mxu0 %vm2206_vm10, %v512_v44  ;;  %vm783_vm12 = vmand %vm2208_vm15, %vm2207_vm0  ;;  %vm927_vm0 = vcmp.lt.s32.totalorder %v1732_v11, 111  ;;  %vm2216_vm15 = vcmp.ge.s32.totalorder %v1740_v18, 0  ;;  %v1512_v11 = vld [vmem:[%s2134_s4] sm:$0xff]  }
  0xac   : > { %vm2209_vm3 = vmmov %vm2202_vm14  ;;  %v928_v7 = vsel %vm927_vm0, %v1503_v62, %v1504_v61 }
  0xad   : > { %1358 = vmatmul.mubr.msk.bf16.vlgmr.msra.gmra.mrb[4].mxu1 %vm2209_vm3, %v1356_v46  ;;  %vm2210_vm4 = vmmov %vm2190_vm1  ;;  %vm2213_vm1 = vcmp.ge.s32.totalorder %v1744_v20, 0  ;;  %v1347_v20 = vld [vmem:[%s2132_s2 + $0x8] sm:$0xf] }
  0xae   : > { %881 = vmatpush1.bf16.msra.mxu1 %v875_v49  ;;  %912 = vmatprep.mubr.bf16.mxu1 %v1587_v2  ;;  %v517_v53 = vsel %vm2210_vm4, %v511_v48, 0  ;;  %vm2211_vm5 = vmmov %vm2209_vm3 }
  0xaf   : > { %1393 = vmatprep.subr.bf16.mxu1 %v1596_v55  ;;  %1346 = vmatmul.mubr.msk.bf16.vlgmr.msra.gmra.mrb[4].mxu0 %vm2211_vm5, %v352_v52  ;;  %vm787_vm14 = vmand %vm783_vm12, %vm2212_vm8  ;;  %vm2217_vm12 = vcmp.lt.s32.totalorder %v1738_v17, 16  ;;  %v929_v17 = vsel %vm927_vm0, %v1504_v61, %v1503_v62 }
  0xb0   : > { %523 = vmatpush1.bf16.msra.mxu0 %v517_v53  ;;  %554 = vmatprep.mubr.bf16.mxu0 %v1587_v2  ;;  %vm782_vm11 = vmand %vm2213_vm1, %vm780_vm7  ;;  %v793_v59 = vsel %vm787_vm14, %v777_v15, 0.0  ;;  %vm2219_vm1 = vcmp.lt.s32.totalorder %v1747_v21, 16  ;;  %v1511_v21 = vld [vmem:[%s1711_s14 + $0x18] sm:$0xff]   ;;  %s293_s14 = scalar_lea.vmem [#allocation2], %s292_s13 }
  0xb1   : > { %vm2214_vm13 = vmmov %vm2210_vm4  ;;  %v797_v3 = vpack.c.bf16 %v793_v59, %v793_v59  ;;  %s1240_s21 = sshll.u32 %s293_s14, 4  ;;  %s2090_s21 = int_to_ptr.vmem [resolvable:$true] %s1240_s21 }
  0xb2   : > { %1354 = vmatprep.subr.msk.bf16.mxu0 %vm2214_vm13, %v645_v54  ;;  %vm786_vm9 = vmand %vm782_vm11, %vm784_vm6  ;;  %s1523_s9 = scalar_lea.vmem %s2090_s21, 16  ;;  %p1530_p0 = scmp.lt.s32.totalorder %s2090_s21, %s1528_s15 }
  0xb3   : > { %vm2215_vm10 = vmmov %vm2209_vm3  ;;  %v792_v4 = vsel %vm786_vm9, %v776_v60, 0.0  ;;  %p1524_p11 = scmp.ne.s32.totalorder %s2090_s21, %s1523_s9  ;;  %p1531_p1 = scmp.lt.s32.totalorder %s1529_s16, %s1523_s9 }
  0xb4   : > { %vm931_vm3 = vmand %vm2217_vm12, %vm2216_vm15  ;;  %v796_v6 = vpack.c.bf16 %v792_v4, %v792_v4 }
  0xb5   : > { %1364 = vmatmul.mubr.msk.bf16.vlgmr.msra.gmra.mrb[8].mxu1 %vm2215_vm10, %v1362_v1  ;;  %vm2218_vm2 = vmmov %vm2210_vm4  ;;  %vm1597_vm4 = vmmov 0   ;;  %p1525_p12 = pnand %p1524_p11, %p1677_p5  ;;  %p1532_p2 = por %p1531_p1, %p1530_p0 }
  0xb6   : > { %1394 = vmatpush3.bf16.msra.mxu1 %v1508_v57  ;;  %v650_v63 = vsel %vm2218_vm2, %v644_v58, 0  ;;  %1401 = vmatprep.mubr.msk.bf16.mxu1 %vm1597_vm4, %v1596_v55  ;;  %vm933_vm14 = vmand %vm931_vm3, %vm2212_vm8  ;;  %v1059_v57 = vpop.permute.xlu1 %1058 }
  0xb7   : > { %1395 = vmatprep.subr.bf16.mxu1 %v1596_v55  ;;  %1349 = vmatmul.mubr.msk.bf16.vlgmr.msra.gmra.mrb[8].mxu0 %vm2211_vm5, %v1347_v20  ;;  %vm930_vm11 = vmand %vm2219_vm1, %vm780_vm7  ;;  %v939_v18 = vsel %vm933_vm14, %v929_v17, 0.0  ;;  %v1039_v20 = vpop.permute.xlu0 %1038  ;;  %p1526_p13 = pneg %p1525_p12 }
  0xb8   : > { %656 = vmatpush1.bf16.msra.mxu0 %v650_v63  ;;  %687 = vmatprep.mubr.bf16.mxu0 %v1587_v2  ;;  %vm2220_vm13 = vmmov %vm2218_vm2  ;;  %v943_v12 = vpack.c.bf16 %v939_v18, %v939_v18 }
  0xb9   : > { %1360 = vmatprep.subr.msk.bf16.mxu0 %vm2220_vm13, %v797_v3  ;;  %vm932_vm9 = vmand %vm930_vm11, %vm784_vm6  ;;  %vm1098_vm6 = vcmask 523264   ;;  %vm1217_vm11 = vcmask 122880   ;;  %p1533_p3 = pnand %p1532_p2, %p1526_p13 }
  0xba   : > { %1396 = vmatpush3.bf16.msra.mxu1 %v1509_v0  ;;  %vm2221_vm7 = vmmov %vm2218_vm2  ;;  %v938_v13 = vsel %vm932_vm9, %v928_v7, 0.0  ;;  %v1044_v4 = vpop.permute.xlu1 %1043 }
  0xbb   : > { %1397 = vmatprep.subr.bf16.mxu1 %v1596_v55  ;;  %v802_v9 = vsel %vm2221_vm7, %v796_v6, 0  ;;  %vm2222_vm10 = vmmov %vm2211_vm5  ;;  %v942_v28 = vpack.c.bf16 %v938_v13, %v938_v13  ;;  %v1049_v7 = vpop.permute.xlu0 %1048 }
  0xbc   : > { %vm2223_vm0 = vmmov %vm2218_vm2  ;;  %vm1164_vm2 = vcmask 130048  }
  0xbd   : > { %vm2224_vm15 = vmmov %vm2223_vm0 }
  0xbe   : > { %1398 = vmatpush3.bf16.msra.mxu1 %v1510_v5  ;;  %v948_v16 = vsel %vm2224_vm15, %v942_v28, 0  ;;  %vm2225_vm12 = vmmov %vm2211_vm5  ;;  %v1054_v13 = vpop.permute.xlu1 %1053 }
  0xbf   : > { %1399 = vmatprep.subr.bf16.mxu1 %v1596_v55  ;;  %1355 = vmatmul.mubr.msk.bf16.vlgmr.msra.gmra.mrb[12].mxu0 %vm2222_vm10, %v1353_v8  ;;  %vm2226_vm3 = vmmov %vm2211_vm5 }
  0xc0   : > { %808 = vmatpush1.bf16.msra.mxu0 %v802_v9  ;;  %839 = vmatprep.mubr.bf16.mxu0 %v1587_v2 }
  0xc1   : > { %1366 = vmatprep.subr.msk.bf16.mxu0 %vm2223_vm0, %v943_v12 }
  0xc2   : > { %1400 = vmatpush3.bf16.msra.mxu1 %v1511_v21 }
  0xc5   : > { %1402 = vmatmul.mubr.msk.bf16.vlgmr.msra.gmra.mrb[12].mxu1 %vm1098_vm6, %v1512_v11 }
  0xc6   : > { %1405 = vmatprep.mubr.msk.bf16.mxu1 %vm1597_vm4, %v1596_v55 }
  0xc7   : > { %1361 = vmatmul.mubr.msk.bf16.vlgmr.msra.gmra.mrb[16].mxu0 %vm2225_vm12, %v1359_v14 }
  0xc8   : > { %954 = vmatpush1.bf16.msra.mxu0 %v948_v16  ;;  %985 = vmatprep.mubr.bf16.mxu0 %v1587_v2  ;;  %v1000_v16 = vpop.permute.xlu0 %999 }
  0xcd   : > { %1406 = vmatmul.mubr.msk.bf16.gmra.mrb[16].mxu1 %vm1098_vm6, %v1513_v19 }
  0xce   : > { %1409 = vmatprep.mubr.msk.bf16.mxu1 %vm1597_vm4, %v1596_v55 }
  0xcf   : > { %1367 = vmatmul.mubr.msk.bf16.vlgmr.msra.gmra.mrb[20].mxu0 %vm2226_vm3, %v1365_v23 }
  0xd5   : > { %1410 = vmatmul.mubr.msk.bf16.gmra.mrb[20].mxu1 %vm1098_vm6, %v1514_v24 }
 0x172   : > { %v633_v22 = vpop.f32.mrb[0].mxu1 }
 0x173   : > { %v635_v25 = vpop.f32.mrb[1].mxu1 }
 0x174   : > { %v637_v2 = vpop.f32.mrb[2].mxu1 }
 0x175   : > { %v638_v26 = vpop.f32.mrb[3].mxu1 }
 0x17a   : > { %v427_v29 = vpop.f32.mrb[0].mxu0 }
 0x17b   : > { %v429_v30 = vpop.f32.mrb[1].mxu0 }
 0x17c   : > { %v431_v31 = vpop.f32.mrb[2].mxu0 }
 0x17d   : > { %v432_v32 = vpop.f32.mrb[3].mxu0 }
 0x180   : > { %v762_v33 = vpop.f32.mrb[4].mxu1 }
 0x181   : > { %v764_v34 = vpop.f32.mrb[5].mxu1 }
 0x182   : > { %v766_v27 = vpop.f32.mrb[6].mxu1  ;;  %v477_v36 = vpop.f32.mrb[4].mxu0 }
 0x183   : > { %v767_v35 = vpop.f32.mrb[7].mxu1  ;;  %v478_v38 = vadd.f32 %v477_v36, %v427_v29  ;;  %v479_v39 = vpop.f32.mrb[5].mxu0 }
 0x184   : > { %v480_v40 = vadd.f32 %v479_v39, %v429_v30  ;;  %v481_v41 = vpop.f32.mrb[6].mxu0 }
 0x185   : > { %v482_v42 = vpop.f32.mrb[7].mxu0 }
 0x188   : > { %v914_v37 = vpop.f32.mrb[8].mxu1 }
 0x189   : > { %v916_v43 = vpop.f32.mrb[9].mxu1 }
 0x18a   : > { %v918_v44 = vpop.f32.mrb[10].mxu1  ;;  %v556_v46 = vpop.f32.mrb[8].mxu0 }
 0x18b   : > { %v919_v45 = vpop.f32.mrb[11].mxu1  ;;  %v563_v47 = vadd.f32 %v556_v46, %v478_v38  ;;  %v558_v48 = vpop.f32.mrb[9].mxu0 }
 0x18c   : > { %v564_v49 = vadd.f32 %v558_v48, %v480_v40  ;;  %v560_v50 = vpop.f32.mrb[10].mxu0 }
 0x18d   : > { %v561_v51 = vpop.f32.mrb[11].mxu0  ;;  %v640_v52 = vadd.f32 %v633_v22, %v563_v47  ;;  %v1181_v50 = vshrl.u32 %v311_v10, 7 }
 0x18e   : > { %v641_v53 = vadd.f32 %v635_v25, %v564_v49 }
 0x192   : > { %v689_v54 = vpop.f32.mrb[12].mxu0 }
 0x193   : > { %v696_v55 = vadd.f32 %v689_v54, %v640_v52  ;;  %v691_v15 = vpop.f32.mrb[13].mxu0 }
 0x194   : > { %v697_v56 = vadd.f32 %v691_v15, %v641_v53  ;;  %v693_v1 = vpop.f32.mrb[14].mxu0 }
 0x195   : > { %v694_v58 = vpop.f32.mrb[15].mxu0  ;;  %v769_v59 = vadd.f32 %v762_v33, %v696_v55  ;;  %v1183_v1 = vadd.s32 16, %v1181_v50 }
 0x196   : > { %v770_v60 = vadd.f32 %v764_v34, %v697_v56  ;;  %v1182_v56 = vadd.s32 8, %v1181_v50  ;;  %v1184_v58 = vadd.s32 24, %v1181_v50 }
 0x198   : > { %v1142_v61 = vpop.f32.mrb[12].mxu1  ;;  %v1187_v10 = vcvt.s32.f32 %v1182_v56 }
 0x199   : > { %v1403_v62 = vpop.f32.mrb[13].mxu1  ;;  %v1143_v34 = vadd.f32 %v1142_v61, %v1039_v20  ;;  %v1186_v61 = vcvt.s32.f32 %v1181_v50 }
 0x19a   : > { %v1145_v0 = vpop.f32.mrb[14].mxu1  ;;  %v841_v3 = vpop.f32.mrb[16].mxu0  ;;  %v1188_v62 = vcvt.s32.f32 %v1183_v1 }
 0x19b   : > { %v1404_v63 = vpop.f32.mrb[15].mxu1  ;;  %v848_v17 = vadd.f32 %v841_v3, %v769_v59  ;;  %v843_v5 = vpop.f32.mrb[17].mxu0  ;;  %v1146_v38 = vadd.f32 %v1145_v0, %v1044_v4  ;;  %v1185_v59 = vadd.s32 32, %v1181_v50  ;;  %v1189_v0 = vcvt.s32.f32 %v1184_v58 }
 0x19c   : > { %v849_v6 = vadd.f32 %v843_v5, %v770_v60  ;;  %v845_v18 = vpop.f32.mrb[18].mxu0 }
 0x19d   : > { %v846_v8 = vpop.f32.mrb[19].mxu0  ;;  %v921_v21 = vadd.f32 %v914_v37, %v848_v17  ;;  %v1165_v37 = vsel %vm1164_vm2, %v1143_v34, -inf  ;;  %v1166_v46 = vsel %vm1164_vm2, %v1146_v38, -inf  ;;  %v1190_v63 = vcvt.s32.f32 %v1185_v59 }
 0x19e   : > { %v922_v9 = vadd.f32 %v916_v43, %v849_v6 }
 0x1a0   : > { %v1150_v12 = vpop.f32.mrb[16].mxu1 }
 0x1a1   : > { %v2060_v11 = vadd.f32 %v1150_v12, %v1049_v7  ;;  %v1407_v28 = vpop.f32.mrb[17].mxu1 }
 0x1a2   : > { %v1153_v14 = vpop.f32.mrb[18].mxu1  ;;  %v987_v24 = vpop.f32.mrb[20].mxu0 }
 0x1a3   : > { %v2062_v19 = vadd.f32 %v1153_v14, %v1054_v13  ;;  %v1408_v23 = vpop.f32.mrb[19].mxu1  ;;  %v994_v22 = vadd.f32 %v987_v24, %v921_v21  ;;  %v989_v25 = vpop.f32.mrb[21].mxu0  ;;  %v1167_v2 = vsel %vm1164_vm2, %v2060_v11, -inf }
 0x1a4   : > { %v995_v29 = vadd.f32 %v989_v25, %v922_v9  ;;  %v991_v30 = vpop.f32.mrb[22].mxu0 }
 0x1a5   : > { %v1168_v26 = vsel %vm1164_vm2, %v2062_v19, -inf  ;;  %v1002_v32 = vadd.f32 %v1000_v16, %v994_v22  ;;  %v992_v33 = vpop.f32.mrb[23].mxu0 }
 0x1a6   : > { %v1172_v31 = vmax.f32 %v1167_v2, %v1168_v26  ;;  %v1003_v27 = vadd.f32 %v1000_v16, %v995_v29 }
 0x1a7   : > { %v1368_v35 = vmul.f32 -1.442695, %v1002_v32 }
 0x1a8   : > { %v1158_v36 = vpop.f32.mrb[20].mxu1  ;;  %v1369_v39 = vmul.f32 -1.442695, %v1003_v27 }
 0x1a9   : > { %v1159_v40 = vadd.f32 %v1158_v36, %v1059_v57  ;;  %v1411_v41 = vpop.f32.mrb[21].mxu1  ;;  %1515 = vpow2.f32 %v1368_v35 }
 0x1aa   : > { %v1161_v42 = vpop.f32.mrb[22].mxu1  ;;  %1517 = vpow2.f32 %v1369_v39 }
 0x1ab   : > { %v1169_v43 = vsel %vm1164_vm2, %v1159_v40, -inf  ;;  %v1412_v44 = vpop.f32.mrb[23].mxu1 }
 0x1ac   : > { %v1170_v45 = vmax.f32 %v1165_v37, %v1169_v43 }
 0x1ae   : > { %v1171_v47 = vmax.f32 %v1170_v45, %v1166_v46 }
 0x1b0   : > { %v1173_v48 = vmax.f32 %v1171_v47, %v1172_v31 }
 0x1b2   : > { %v1174_v49 = vrot.slane %v1173_v48, 4 }
 0x1b3   : > { %v1516_v51 = vpop.eup %1515 }
 0x1b4   : > { %v1175_v52 = vmax.f32 %v1173_v48, %v1174_v49  ;;  %v1518_v53 = vpop.eup %1517  ;;  %v1010_v54 = vadd.f32 1.0, %v1516_v51 }
 0x1b5   : > { %v1011_v55 = vadd.f32 1.0, %v1518_v53 }
 0x1b6   : > { %v1176_v15 = vrot.slane %v1175_v52, 2  ;;  %1519 = vrcp.f32 %v1010_v54 }
 0x1b7   : > { %1521 = vrcp.f32 %v1011_v55 }
 0x1b8   : > { %v1177_v57 = vmax.f32 %v1175_v52, %v1176_v15 }
 0x1ba   : > { %v1178_v60 = vrot.slane %v1177_v57, 1 }
 0x1bc   : > { %v1179_v20 = vmax.f32 %v1177_v57, %v1178_v60 }
 0x1be   : > { %vm1191_vm4 = vcmp.ge.f32.partialorder %v1143_v34, %v1179_v20  ;;  %vm1192_vm5 = vcmp.ge.f32.partialorder %v1146_v38, %v1179_v20  ;;  %vm1193_vm8 = vcmp.ge.f32.partialorder %v2060_v11, %v1179_v20  ;;  %vm1194_vm14 = vcmp.ge.f32.partialorder %v2062_v19, %v1179_v20 }
 0x1bf   : > { %vm1195_vm1 = vcmp.ge.f32.partialorder %v1159_v40, %v1179_v20  ;;  %v1196_v3 = vsel %vm1191_vm4, %v1186_v61, 40.0  ;;  %v1198_v4 = vsel %vm1193_vm8, %v1188_v62, 40.0  ;;  %v1197_v17 = vsel %vm1192_vm5, %v1187_v10, 40.0 }
 0x1c0   : > { %v1199_v5 = vsel %vm1194_vm14, %v1189_v0, 40.0  ;;  %v1200_v6 = vsel %vm1195_vm1, %v1190_v63, 40.0  ;;  %v1201_v18 = vsel %vm1164_vm2, %v1196_v3, inf  ;;  %v1520_v7 = vpop.eup %1519  ;;  %v1203_v8 = vsel %vm1164_vm2, %v1198_v4, inf }
 0x1c1   : > { %v1204_v21 = vsel %vm1164_vm2, %v1199_v5, inf  ;;  %v1205_v9 = vsel %vm1164_vm2, %v1200_v6, inf  ;;  %v1522_v12 = vpop.eup %1521  ;;  %1016 = vst [vmem:[%s308_s19] sm:$0xff] %v1520_v7  ;;  %v1202_v28 = vsel %vm1164_vm2, %v1197_v17, inf }
 0x1c2   : > { %v1206_v13 = vmin.f32 %v1201_v18, %v1205_v9  ;;  %v1208_v11 = vmin.f32 %v1203_v8, %v1204_v21  ;;  %1017 = vst [vmem:[%s308_s19 + $0x8] sm:$0xff] %v1522_v12 }
 0x1c4   : > { %v1207_v14 = vmin.f32 %v1206_v13, %v1202_v28 }
 0x1c6   : > { %v1209_v16 = vmin.f32 %v1207_v14, %v1208_v11 }
 0x1c8   : > { %v1210_v19 = vrot.slane %v1209_v16, 4 }
 0x1ca   : > { %v1211_v23 = vmin.f32 %v1209_v16, %v1210_v19 }
 0x1cc   : > { %v1212_v24 = vrot.slane %v1211_v23, 2 }
 0x1ce   : > { %v1213_v22 = vmin.f32 %v1211_v23, %v1212_v24 }
 0x1d0   : > { %v1214_v25 = vrot.slane %v1213_v22, 1 }
 0x1d2   : > { %v1215_v2 = vmin.f32 %v1213_v22, %v1214_v25 }
 0x1d4   : > { %v1413_v26 = vtrunc.f32 %v1215_v2 }
 0x1d6   : > { %v1414_v29 = vcvt.f32.s32 %v1413_v26 }
 0x1d8   : > { %1218 = vst.msk [vmem:[%s293_s14] sm:$0x1] %vm1217_vm11, %v1414_v29 }
 0x1d9   : > { %1536 = shalt.err (!%p1533_p3)
}
 0x1da   : > { %s1537_s17 = scalar_lea.hbm %s2088_s29, 16  ;;  %s1541_s13 = scalar_lea.hbm %s2137_s7, 32 }
 0x1db   : > { %p1538_p4 = scmp.ne.s32.totalorder %s2088_s29, %s1537_s17  ;;  %p1542_p9 = scmp.lt.u32.totalorder %s2088_s29, %s2137_s7 }
 0x1dc   : > { %p1543_p10 = scmp.lt.u32.totalorder %s1541_s13, %s1537_s17  ;;  %p1545_p12 = scmp.lt.u32.totalorder %s1537_s17, %s2088_s29 }
 0x1dd   : > { %p1539_p7 = pnand %p1538_p4, %p1677_p5 }
 0x1de   : > { %p1544_p11 = por %p1543_p10, %p1542_p9 }
 0x1df   : > { %p1540_p8 = pneg %p1539_p7 }
 0x1e0   : > { %p1546_p13 = por %p1545_p12, %p1544_p11 }
 0x1e2   : > { %p1547_p0 = pnand %p1546_p13, %p1540_p8 }
 0x1e4   : > { %1550 = shalt.err (!%p1547_p0)
}
 0x1e5   : > { %1415 = dma.vmem_to_hbm [thread:$0]  (%p1677_p5), %s2090_s21, 16, %s2088_s29, %s1225_s8  }
 0x1e6 PF: > { %p1421_p1 = scmp.ge.s32.totalorder %s1585_s27, 2  ;;  %s1260_s22 = sand.u32 1, %s1573_s24  }
 0x1e7   : > { %s1261_s23 = scalar_lea.sflag [#allocation3], %s1260_s22 }
 0x1e8   : > { %p1418_p2 = pnand %p1421_p1, %p1681_p6 }
 0x1ea   : > { %1568 = dma.done.wait (!%p1418_p2), %s1261_s23, 16  }
 0x1eb   : > { %1570 = vsyncadd (!%p1418_p2), %s1261_s23, 4294967280  ;;  %p18_p3 = scmp.ge.s32.totalorder %s1664_s30, 4   ;;  %s2227_s24 = smov %s1577_s25 }
 0x1ec   : > { %s2228_s25 = smov %s1581_s26  ;;  %s2229_s26 = smov %s1675_s10 }
 0x1ed   : > { %s2230_s27 = smov %s1664_s30  ;;  %20 = sbr.rel (!%p18_p3) target bundleno = 3 (0x3), region = 102 }
 0x1f4   :  { %1265 = vsyncpa [#allocation3], 1 }
 0x1f5   :  { %1267 = vsyncpa [#allocation3 + $0x1], 1 }

</bundles_post_ra>
